<compile_context>
chip_gen: v7x
topology: tpu7x:2x2x1
jax: 0.10.0
libtpu: 0.0.40
codegen_flags: <defaults>
</compile_context>

<pallas_src>
import functools

import jax
import jax.numpy as jnp
from jax.experimental import pallas as pl
from jax.experimental.pallas import tpu as pltpu


def _round_up(x, m):
    return ((x + m - 1) // m) * m


def task_network_seq_kernel(x_ref, h0_ref, w_ih_ref, rec_ref, w_ho_ref,
                            out_ref, hfin_ref, h_state, *, n_out):
    """One recurrent timestep per grid iteration (grid=(T,), "arbitrary").

    h_state (VMEM scratch) carries the hidden activations across steps, so the
    weights stay VMEM-resident and all T steps cost a single kernel launch.
    """
    t = pl.program_id(0)

    # Initial hidden state: (1, Nh) broadcast in-kernel (torch broadcasts the
    # (n_bias, n_hidden) hidden_activations against the (B, n_hidden) projection).
    @pl.when(t == 0)
    def _():
        h_state[...] = jnp.broadcast_to(h0_ref[...], h_state.shape)

    # hidden = sigmoid(X @ W_ih + H_prev * diag(W_rec))
    # The recurrent weight matrix is diagonal, so the matmul is a VPU multiply.
    rec = h_state[...] * rec_ref[...]
    pre = jnp.dot(x_ref[...], w_ih_ref[...],
                  preferred_element_type=jnp.float32) + rec
    h = pl.reciprocal(1.0 + jnp.exp(-pre), approx=True)          # sigmoid (EUP recip)
    h_state[...] = h
    hfin_ref[...] = h     # constant output block index -> final-step value survives

    # outputs = softmax(H @ W_ho) over the real (unpadded) output lanes.
    logits = jnp.dot(h.astype(jnp.bfloat16), w_ho_ref[...],
                     preferred_element_type=jnp.float32)
    if n_out < logits.shape[-1]:
        lane = jax.lax.broadcasted_iota(jnp.int32, logits.shape, 1)
        logits = jnp.where(lane < n_out, logits, -1e30)          # mask padded lanes
    m = jnp.max(logits, axis=-1, keepdims=True)
    e = jnp.exp(logits - m)
    inv = pl.reciprocal(jnp.sum(e, axis=-1, keepdims=True), approx=True)
    out_ref[...] = e * inv


def task_network_forward_seq(xs, h0, w_ih, rec_diag, w_ho):
    """Run T stateful TaskNetwork.forward steps in ONE pallas_call.

    xs:       (T, B, n_in)
    h0:       (n_hidden,) or (1, n_hidden)   initial hidden_activations (n_bias == 1)
    w_ih:     (n_in, n_hidden)               input_hidden_weights
    rec_diag: (n_hidden,)                    diagonal of hidden_recurrent_weights
    w_ho:     (n_hidden, n_out)              hidden_output_weights
    returns:  (softmax outputs (T, B, n_out), final hidden activations (B, n_hidden))
    """
    T, B, n_in = xs.shape
    n_hidden = w_ih.shape[1]
    n_out = w_ho.shape[1]

    # Lane-dense / sublane-aligned padding: 128-lane last dims give unmasked vector
    # stores; batch padded to 16 sublanes (bf16 sublane packing).
    Bp = _round_up(max(B, 1), 16)
    Ninp = _round_up(n_in, 128)
    Nhp = _round_up(n_hidden, 128)
    Noutp = _round_up(n_out, 128)

    xs_p = jnp.zeros((T, Bp, Ninp), jnp.bfloat16)
    xs_p = xs_p.at[:, :B, :n_in].set(xs.astype(jnp.bfloat16))
    w_ih_p = jnp.zeros((Ninp, Nhp), jnp.bfloat16)
    w_ih_p = w_ih_p.at[:n_in, :n_hidden].set(w_ih.astype(jnp.bfloat16))
    w_ho_p = jnp.zeros((Nhp, Noutp), jnp.bfloat16)
    w_ho_p = w_ho_p.at[:n_hidden, :n_out].set(w_ho.astype(jnp.bfloat16))
    rec_p = jnp.zeros((1, Nhp), jnp.float32)
    rec_p = rec_p.at[0, :n_hidden].set(jnp.asarray(rec_diag, jnp.float32))
    h0_p = jnp.zeros((1, Nhp), jnp.float32)
    h0_p = h0_p.at[0, :n_hidden].set(jnp.asarray(h0, jnp.float32).reshape(-1))

    kernel = functools.partial(task_network_seq_kernel, n_out=n_out)

    out_p, hfin_p = pl.pallas_call(
        kernel,
        out_shape=(
            jax.ShapeDtypeStruct((T, Bp, Noutp), jnp.float32),
            jax.ShapeDtypeStruct((Bp, Nhp), jnp.float32),
        ),
        grid_spec=pltpu.PrefetchScalarGridSpec(
            num_scalar_prefetch=0,
            grid=(T,),
            in_specs=[
                pl.BlockSpec((None, Bp, Ninp), lambda t: (t, 0, 0)),   # x_t
                pl.BlockSpec((1, Nhp), lambda t: (0, 0)),              # h0 (resident)
                pl.BlockSpec((Ninp, Nhp), lambda t: (0, 0)),           # W_ih (resident)
                pl.BlockSpec((1, Nhp), lambda t: (0, 0)),              # diag(W_rec)
                pl.BlockSpec((Nhp, Noutp), lambda t: (0, 0)),          # W_ho (resident)
            ],
            out_specs=[
                pl.BlockSpec((None, Bp, Noutp), lambda t: (t, 0, 0)),  # softmax_t
                pl.BlockSpec((Bp, Nhp), lambda t: (0, 0)),             # final hidden
            ],
            scratch_shapes=[pltpu.VMEM((Bp, Nhp), jnp.float32)],       # recurrent carry
        ),
        compiler_params=pltpu.CompilerParams(
            dimension_semantics=("arbitrary",)),
    )(xs_p, h0_p, w_ih_p, rec_p, w_ho_p)

    return out_p[:, :B, :n_out], hfin_p[:B, :n_hidden]


def task_network_forward(x, h0, w_ih, rec_diag, w_ho):
    """Single TaskNetwork.forward step (from a fresh (1, n_hidden) state)."""
    out, h_new = task_network_forward_seq(x[None], h0, w_ih, rec_diag, w_ho)
    return out[0], h_new


def reference_forward(x, h_prev, w_ih, w_rec_full, w_ho):
    """Pure-JAX mirror of the torch forward (full recurrent matrix, f32)."""
    h = jax.nn.sigmoid(x @ w_ih + h_prev @ w_rec_full)
    o = jax.nn.softmax(h @ w_ho, axis=-1)
    return o, h


if __name__ == "__main__":
    B, n_in, n_hidden, n_out, n_bias, T = 2, 8, 32, 16, 1, 4

    key = jax.random.PRNGKey(0)
    kx, k1, k2, k3 = jax.random.split(key, 4)
    xs = jax.random.normal(kx, (T, B, n_in), jnp.float32)
    w_ih = jax.random.normal(k1, (n_in, n_hidden), jnp.float32) * 0.5
    w_ho = jax.random.normal(k2, (n_hidden, n_out), jnp.float32) * 0.5
    rec_diag = jax.random.normal(k3, (n_hidden,), jnp.float32) * 0.5
    h0 = jnp.zeros((n_bias, n_hidden), jnp.float32)   # initial hidden_activations

    # Fused recurrent sequence: one pallas_call for all T stateful forward() steps.
    outs, h_fin = task_network_forward_seq(xs, h0, w_ih, rec_diag, w_ho)
    jax.block_until_ready((outs, h_fin))

    # Single-step wrapper (mirrors one TaskNetwork.forward call from the fresh state).
    out0, h1 = task_network_forward(xs[0], h0, w_ih, rec_diag, w_ho)
    jax.block_until_ready((out0, h1))

    # Pure-JAX stepwise reference using the FULL (diagonal) recurrent matrix — this
    # validates the diag-only optimization against the torch matmul semantics.
    w_rec_full = jnp.diag(rec_diag)
    h_ref = jnp.broadcast_to(h0, (B, n_hidden))
    for t in range(T):
        o_ref, h_ref = reference_forward(xs[t], h_ref, w_ih, w_rec_full, w_ho)
        assert jnp.allclose(outs[t], o_ref, atol=2e-2), f"output mismatch at step {t}"
        if t == 0:
            assert jnp.allclose(out0, o_ref, atol=2e-2), "single-step output mismatch"
            assert jnp.allclose(h1, h_ref, atol=2e-2), "single-step hidden mismatch"
    assert jnp.allclose(h_fin, h_ref, atol=2e-2), "final hidden state mismatch"

    print("KERNEL_OK")
</pallas_src>

<mosaic_0001>
module attributes {stable_mosaic.version = 11 : i64} {
  func.func @task_network_seq_kernel(%arg0: i32, %arg1: memref<1x16x128xbf16, #tpu.memory_space<vmem>>, %arg2: memref<1x128xf32, #tpu.memory_space<vmem>>, %arg3: memref<128x128xbf16, #tpu.memory_space<vmem>>, %arg4: memref<1x128xf32, #tpu.memory_space<vmem>>, %arg5: memref<128x128xbf16, #tpu.memory_space<vmem>>, %arg6: memref<1x16x128xf32, #tpu.memory_space<vmem>>, %arg7: memref<16x128xf32, #tpu.memory_space<vmem>>, %arg8: memref<16x128xf32, #tpu.memory_space<vmem>>) attributes {dimension_semantics = [#tpu.dimension_semantics<arbitrary>], iteration_bounds = array<i64: 4>, scalar_prefetch = 0 : i64, scratch_operands = 1 : i64, tpu.core_type = #tpu.core_type<tc>, window_params = [{transform_indices = @transform_0, window_bounds = array<i64: 1, 16, 128>}, {pipeline_mode = #tpu.pipeline_mode<synchronous>, transform_indices = @transform_1, window_bounds = array<i64: 1, 128>}, {pipeline_mode = #tpu.pipeline_mode<synchronous>, transform_indices = @transform_2, window_bounds = array<i64: 128, 128>}, {pipeline_mode = #tpu.pipeline_mode<synchronous>, transform_indices = @transform_3, window_bounds = array<i64: 1, 128>}, {pipeline_mode = #tpu.pipeline_mode<synchronous>, transform_indices = @transform_4, window_bounds = array<i64: 128, 128>}, {transform_indices = @transform_5, window_bounds = array<i64: 1, 16, 128>}, {pipeline_mode = #tpu.pipeline_mode<synchronous>, transform_indices = @transform_6, window_bounds = array<i64: 16, 128>}]} {
    %c0_i32 = arith.constant 0 : i32
    %0 = arith.cmpi eq, %arg0, %c0_i32 : i32
    %1 = arith.extui %0 : i1 to i32
    %c0_i32_0 = arith.constant 0 : i32
    %2 = arith.cmpi ne, %1, %c0_i32_0 : i32
    scf.if %2 {
      %c0_24 = arith.constant 0 : index
      %c0_25 = arith.constant 0 : index
      %41 = vector.load %arg2[%c0_24, %c0_25] : memref<1x128xf32, #tpu.memory_space<vmem>>, vector<1x128xf32>
      %42 = vector.shape_cast %41 : vector<1x128xf32> to vector<1x128xf32>
      %43 = vector.broadcast %42 : vector<1x128xf32> to vector<16x128xf32>
      %c0_26 = arith.constant 0 : index
      %c0_27 = arith.constant 0 : index
      %44 = vector.load %arg8[%c0_26, %c0_27] : memref<16x128xf32, #tpu.memory_space<vmem>>, vector<16x128xf32>
      tpu.vector_store %arg8[%c0_26, %c0_27], %43 {strides = array<i32>} : memref<16x128xf32, #tpu.memory_space<vmem>>, vector<16x128xf32>,
    } else {
    }
    %c0 = arith.constant 0 : index
    %c0_1 = arith.constant 0 : index
    %3 = vector.load %arg8[%c0, %c0_1] : memref<16x128xf32, #tpu.memory_space<vmem>>, vector<16x128xf32>
    %c0_2 = arith.constant 0 : index
    %c0_3 = arith.constant 0 : index
    %4 = vector.load %arg4[%c0_2, %c0_3] : memref<1x128xf32, #tpu.memory_space<vmem>>, vector<1x128xf32>
    %5 = vector.broadcast %4 : vector<1x128xf32> to vector<16x128xf32>
    %6 = arith.mulf %3, %5 : vector<16x128xf32>
    %c0_4 = arith.constant 0 : index
    %c0_5 = arith.constant 0 : index
    %c0_6 = arith.constant 0 : index
    %7 = vector.load %arg1[%c0_4, %c0_5, %c0_6] : memref<1x16x128xbf16, #tpu.memory_space<vmem>>, vector<1x16x128xbf16>
    %8 = vector.shape_cast %7 : vector<1x16x128xbf16> to vector<16x128xbf16>
    %c0_7 = arith.constant 0 : index
    %c0_8 = arith.constant 0 : index
    %9 = vector.load %arg3[%c0_7, %c0_8] : memref<128x128xbf16, #tpu.memory_space<vmem>>, vector<128x128xbf16>
    %cst = arith.constant dense<0.000000e+00> : vector<16x128xf32>
    %10 = tpu.matmul %8, %9, %cst {dimension_numbers = #tpu.dot_dimension_numbers<[1], [0], [0], [1], [0, 0, 1, 1], [], []>} : vector<16x128xbf16>, vector<128x128xbf16>, vector<16x128xf32> -> vector<16x128xf32>
    %11 = arith.addf %10, %6 : vector<16x128xf32>
    %cst_9 = arith.constant 0.000000e+00 : f32
    %12 = vector.broadcast %cst_9 : f32 to vector<16x128xf32>
    %13 = arith.subf %12, %11 : vector<16x128xf32>
    %14 = math.exp %13 : vector<16x128xf32>
    %cst_10 = arith.constant 1.000000e+00 : f32
    %15 = vector.broadcast %cst_10 : f32 to vector<16x128xf32>
    %16 = arith.addf %15, %14 : vector<16x128xf32>
    %17 = tpu.reciprocal %16 {approx = true} : vector<16x128xf32> -> vector<16x128xf32>
    %c0_11 = arith.constant 0 : index
    %c0_12 = arith.constant 0 : index
    %18 = vector.load %arg8[%c0_11, %c0_12] : memref<16x128xf32, #tpu.memory_space<vmem>>, vector<16x128xf32>
    tpu.vector_store %arg8[%c0_11, %c0_12], %17 {strides = array<i32>} : memref<16x128xf32, #tpu.memory_space<vmem>>, vector<16x128xf32>,
    %c0_13 = arith.constant 0 : index
    %c0_14 = arith.constant 0 : index
    %19 = vector.load %arg7[%c0_13, %c0_14] : memref<16x128xf32, #tpu.memory_space<vmem>>, vector<16x128xf32>
    tpu.vector_store %arg7[%c0_13, %c0_14], %17 {strides = array<i32>} : memref<16x128xf32, #tpu.memory_space<vmem>>, vector<16x128xf32>,
    %20 = arith.truncf %17 : vector<16x128xf32> to vector<16x128xbf16>
    %c0_15 = arith.constant 0 : index
    %c0_16 = arith.constant 0 : index
    %21 = vector.load %arg5[%c0_15, %c0_16] : memref<128x128xbf16, #tpu.memory_space<vmem>>, vector<128x128xbf16>
    %cst_17 = arith.constant dense<0.000000e+00> : vector<16x128xf32>
    %22 = tpu.matmul %20, %21, %cst_17 {dimension_numbers = #tpu.dot_dimension_numbers<[1], [0], [0], [1], [0, 0, 1, 1], [], []>} : vector<16x128xbf16>, vector<128x128xbf16>, vector<16x128xf32> -> vector<16x128xf32>
    %23 = tpu.iota {dimensions = array<i32: 1>} : vector<16x128xi32>
    %c16_i32 = arith.constant 16 : i32
    %24 = vector.broadcast %c16_i32 : i32 to vector<16x128xi32>
    %25 = arith.cmpi slt, %23, %24 : vector<16x128xi32>
    %cst_18 = arith.constant -1.000000e+30 : f32
    %26 = vector.broadcast %cst_18 : f32 to vector<16x128xf32>
    %27 = arith.select %25, %22, %26 : vector<16x128xi1>, vector<16x128xf32>
    %cst_19 = arith.constant dense<0xFF800000> : vector<16xf32>
    %28 = vector.multi_reduction <maximumf>, %27, %cst_19 [1] : vector<16x128xf32> to vector<16xf32>
    %29 = vector.shape_cast %28 : vector<16xf32> to vector<16x1xf32>
    %30 = vector.broadcast %29 : vector<16x1xf32> to vector<16x128xf32>
    %31 = arith.subf %27, %30 : vector<16x128xf32>
    %32 = math.exp %31 : vector<16x128xf32>
    %cst_20 = arith.constant dense<0.000000e+00> : vector<16xf32>
    %33 = vector.multi_reduction <add>, %32, %cst_20 [1] : vector<16x128xf32> to vector<16xf32>
    %34 = vector.shape_cast %33 : vector<16xf32> to vector<16x1xf32>
    %35 = tpu.reciprocal %34 {approx = true} : vector<16x1xf32> -> vector<16x1xf32>
    %36 = vector.broadcast %35 : vector<16x1xf32> to vector<16x128xf32>
    %37 = arith.mulf %32, %36 : vector<16x128xf32>
    %c0_21 = arith.constant 0 : index
    %c0_22 = arith.constant 0 : index
    %c0_23 = arith.constant 0 : index
    %38 = vector.load %arg6[%c0_21, %c0_22, %c0_23] : memref<1x16x128xf32, #tpu.memory_space<vmem>>, vector<1x16x128xf32>
    %39 = vector.shape_cast %38 : vector<1x16x128xf32> to vector<16x128xf32>
    %40 = vector.shape_cast %37 : vector<16x128xf32> to vector<1x16x128xf32>
    tpu.vector_store %arg6[%c0_21, %c0_22, %c0_23], %40 {strides = array<i32>} : memref<1x16x128xf32, #tpu.memory_space<vmem>>, vector<1x16x128xf32>,
    return
  }
  func.func @transform_0(%arg0: i32) -> (i32, i32, i32) {
    %c0_i32 = arith.constant 0 : i32
    %c0_i32_0 = arith.constant 0 : i32
    %c0_i32_1 = arith.constant 0 : i32
    return %arg0, %c0_i32, %c0_i32_0 : i32, i32, i32
  }
  func.func @transform_1(%arg0: i32) -> (i32, i32) {
    %c0_i32 = arith.constant 0 : i32
    %c0_i32_0 = arith.constant 0 : i32
    %c0_i32_1 = arith.constant 0 : i32
    return %c0_i32, %c0_i32_0 : i32, i32
  }
  func.func @transform_2(%arg0: i32) -> (i32, i32) {
    %c0_i32 = arith.constant 0 : i32
    %c0_i32_0 = arith.constant 0 : i32
    %c0_i32_1 = arith.constant 0 : i32
    return %c0_i32, %c0_i32_0 : i32, i32
  }
  func.func @transform_3(%arg0: i32) -> (i32, i32) {
    %c0_i32 = arith.constant 0 : i32
    %c0_i32_0 = arith.constant 0 : i32
    %c0_i32_1 = arith.constant 0 : i32
    return %c0_i32, %c0_i32_0 : i32, i32
  }
  func.func @transform_4(%arg0: i32) -> (i32, i32) {
    %c0_i32 = arith.constant 0 : i32
    %c0_i32_0 = arith.constant 0 : i32
    %c0_i32_1 = arith.constant 0 : i32
    return %c0_i32, %c0_i32_0 : i32, i32
  }
  func.func @transform_5(%arg0: i32) -> (i32, i32, i32) {
    %c0_i32 = arith.constant 0 : i32
    %c0_i32_0 = arith.constant 0 : i32
    %c0_i32_1 = arith.constant 0 : i32
    return %arg0, %c0_i32, %c0_i32_0 : i32, i32, i32
  }
  func.func @transform_6(%arg0: i32) -> (i32, i32) {
    %c0_i32 = arith.constant 0 : i32
    %c0_i32_0 = arith.constant 0 : i32
    %c0_i32_1 = arith.constant 0 : i32
    return %c0_i32, %c0_i32_0 : i32, i32
  }
}

</mosaic_0001>

<bundles_post_ra>
// kernel: tpu_custom_call.1
= control target key start
LH: loop header
LB: loop body
LE: loop exit
PB: predicated region body
PF: predicated region fallthrough
CT: control target
= control target key end

     0   :  { %12 = vsyncpa [#allocation4], 0  ;;  %s1438_s0 = inlined_call_operand.hbm [shape: bf16[4,16,128], index: 0, kind: input, shape index: {}]   ;;  %s1439_s1 = inlined_call_operand.vmem [shape: f32[1,128], index: 1, kind: input, shape index: {}]   ;;  %s1440_s2 = inlined_call_operand.hbm [shape: bf16[128,128], index: 2, kind: input, shape index: {}]   ;;  %s1441_s3 = inlined_call_operand.vmem [shape: f32[1,128], index: 3, kind: input, shape index: {}]   ;;  %s1442_s4 = inlined_call_operand.hbm [shape: bf16[128,128], index: 4, kind: input, shape index: {}]   ;;  %s1443_s5 = inlined_call_operand.hbm [shape: f32[4,16,128], index: 5, kind: output, shape index: {0}]   ;;  %s1444_s6 = inlined_call_operand.hbm [shape: f32[16,128], index: 6, kind: output, shape index: {1}]  }
   0x1   :  { %14 = vsyncpa [#allocation4 + $0x1], 0 }
   0x2   :  { %15 = vsyncpa [#allocation7], 0 }
   0x3   :  { %16 = vsyncpa [#allocation5], 0 }
   0x4   :  { %18 = vsyncpa [#allocation5 + $0x1], 0 }
   0x5   :  { %19 = vsyncpa [#allocation11], 0  ;;  %s1158_s21 = smov 0   ;;  %s1160_s22 = smov 0  }
   0x6   :  { %s1162_s23 = smov 0   ;;  %s1164_s24 = smov 0  }
   0x7 LB: > { %s1179_s25 = sadd.s32 4294967295, %s1110_s24   ;;  %s711_s26 = sadd.s32 4294967294, %s1110_s24   ;;  %s1110_s24 = sphi %s1164_s24, %s1469_s24   ;;  %s1106_s23 = sphi %s1162_s23, %s1468_s23   ;;  %s1102_s22 = sphi %s1160_s22, %s1467_s22   ;;  %s1098_s21 = sphi %s1158_s21, %s1466_s21  }
   0x8   : > { %p45_p0 = scmp.ne.s32.totalorder %s1102_s22, %s1098_s21  ;;  %p1445_p1 = scmp.eq.s32.totalorder %s1179_s25, 0 }
   0x9   : > { %p159_p3 = scmp.eq.s32.totalorder %s711_s26, 3  ;;  %p712_p5 = scmp.ge.s32.totalorder %s1110_s24, 1 }
   0xa   : > { %p1188_p4 = por %p1445_p1, %p45_p0  ;;  %p187_p7 = scmp.lt.s32.totalorder %s1110_s24, 5 }
   0xb   : > { %p1193_p6 = por %p159_p3, %p45_p0  ;;  %s1112_s30 = smov [#allocation6]  }
   0xc   : > { %s1448_s27 = scalar_select %p1188_p4, 1, 0 }
   0xd   : > { %s1449_s28 = scalar_select %p1193_p6, 1, 0 }
   0xe   : > { %p1199_p9 = pnand %p712_p5, %p187_p7  ;;  %s202_s7 = sshll.u32 %s1112_s30, 4  ;;  %s203_s7 = int_to_ptr.vmem [resolvable:$true] %s202_s7 }
   0xf   : > { %s1113_s9 = smov [#allocation8]   ;;  %s924_s13 = scalar_lea.hbm %s1440_s2, 1024 }
  0x10   : > { %s1450_s29 = scalar_select %p1199_p9, 1, 0 }
  0x11   : > { %p827_p10 = pneg %p1199_p9  ;;  %s218_s10 = sshll.u32 %s1113_s9, 4  ;;  %s1211_s10 = int_to_ptr.vmem [resolvable:$true] %s218_s10 }
  0x12   : > { %p925_p12 = scmp.ne.s32.totalorder %s1440_s2, %s924_s13  ;;  %p931_p5 = scmp.lt.u32.totalorder %s924_s13, %s1440_s2 }
  0x13   : > { %p1207_p11 = pnand %p827_p10, %p1445_p1 }
  0x15   : > { %p926_p13 = pneg %p1207_p11 }
  0x17   : > { %p927_p0 = pnand %p926_p13, %p925_p12 }
  0x19   : > { %p928_p3 = pneg %p927_p0 }
  0x1b   : > { %p933_p7 = pnand %p931_p5, %p928_p3 }
  0x1d   : > { %936 = shalt.err (!%p933_p7)
}
  0x1e   : > { %s937_s18 = scalar_lea.vmem %s203_s7, 1024  ;;  %p945_p2 = scmp.lt.s32.totalorder %s203_s7, %s203_s7 }
  0x1f   : > { %p938_p10 = scmp.ne.s32.totalorder %s203_s7, %s937_s18  ;;  %p946_p6 = scmp.lt.s32.totalorder %s937_s18, %s937_s18 }
  0x21   : > { %p940_p8 = pnand %p938_p10, %p926_p13  ;;  %p947_p4 = por %p946_p6, %p945_p2 }
  0x23   : > { %p941_p1 = pneg %p940_p8 }
  0x25   : > { %p948_p9 = pnand %p947_p4, %p941_p1 }
  0x27   : > { %951 = shalt.err (!%p948_p9)
}
  0x28   : > { %s1114_s19 = smov 64   ;;  %s1115_s20 = smov 4  }
  0x29   : > { %830 = dma.hbm_to_vmem [thread:$0]  (!%p1207_p11), %s1440_s2, 1024, %s203_s7, [#allocation7], %s1114_s19, %s1114_s19, %s1115_s20  }
  0x2a   : > { %s952_s12 = scalar_lea.hbm %s1442_s4, 1024 }
  0x2b   : > { %p953_p1 = scmp.ne.s32.totalorder %s1442_s4, %s952_s12  ;;  %p959_p6 = scmp.lt.u32.totalorder %s952_s12, %s1442_s4 }
  0x2d   : > { %p955_p2 = pnand %p953_p1, %p926_p13 }
  0x2f   : > { %p956_p4 = pneg %p955_p2 }
  0x31   : > { %p961_p8 = pnand %p959_p6, %p956_p4 }
  0x33   : > { %964 = shalt.err (!%p961_p8)
}
  0x34   : > { %s965_s7 = scalar_lea.vmem %s1211_s10, 1024  ;;  %p973_p3 = scmp.lt.s32.totalorder %s1211_s10, %s1211_s10 }
  0x35   : > { %p966_p9 = scmp.ne.s32.totalorder %s1211_s10, %s965_s7  ;;  %p974_p5 = scmp.lt.s32.totalorder %s965_s7, %s965_s7 }
  0x37   : > { %p968_p12 = pnand %p966_p9, %p926_p13  ;;  %p975_p7 = por %p974_p5, %p973_p3 }
  0x39   : > { %p969_p0 = pneg %p968_p12 }
  0x3b   : > { %p976_p10 = pnand %p975_p7, %p969_p0 }
  0x3d   : > { %979 = shalt.err (!%p976_p10)
}
  0x3e   : > { %833 = dma.hbm_to_vmem [thread:$0]  (!%p1207_p11), %s1442_s4, 1024, %s1211_s10, [#allocation7], %s1114_s19, %s1114_s19, %s1115_s20  }
  0x3f   : > { %s1267_s8 = sadd.s32 1, %s1110_s24   ;;  %s32_s26 = sadd.s32 1, %s1106_s23 }
  0x40   : > { %s29_s30 = ssub.s32 %s1110_s24, %s1267_s8  ;;  %p39_p13 = scmp.ne.s32.totalorder %s1106_s23, %s1102_s22 }
  0x41   : > { %p30_p1 = scmp.eq.s32.totalorder %s29_s30, 0  ;;  %p40_p2 = scmp.eq.s32.totalorder %s1110_s24, 0 }
  0x42   : > { %p1452_p4 = scmp.eq.s32.totalorder %s1179_s25, 3  ;;  %p844_p8 = scmp.lt.s32.totalorder %s1110_s24, 4 }
  0x43   : > { %s1283_s11 = scalar_select %p30_p1, %s1106_s23, %s32_s26  }
  0x44   : > { %p1277_p6 = por %p1452_p4, %p39_p13  ;;  %p41_p9 = por %p40_p2, %p39_p13 }
  0x45   : > { %s232_s12 = sand.u32 1, %s1106_s23   ;;  %s751_s10 = sshll.u32 %s1110_s24, 7 }
  0x46   : > { %s716_s13 = sshll.u32 %s232_s12, 3  ;;  %s1290_s16 = scalar_lea.hbm %s1438_s0, %s751_s10 }
  0x47   : > { %s236_s7 = scalar_lea.vmem [#allocation3], %s716_s13  ;;  %p1294_p11 = pnand %p844_p8, %p41_p9 }
  0x48   : > { %s243_s17 = sshll.u32 %s236_s7, 4  ;;  %s1298_s26 = scalar_lea.sflag [#allocation4], %s232_s12  ;;  %s1292_s17 = int_to_ptr.vmem [resolvable:$true] %s243_s17 }
  0x49   : > { %s980_s30 = scalar_lea.hbm %s1290_s16, 128  ;;  %p982_p0 = pneg %p1294_p11 }
  0x4a   : > { %p981_p12 = scmp.ne.s32.totalorder %s1290_s16, %s980_s30  ;;  %s985_s14 = scalar_lea.hbm %s1438_s0, 512 }
  0x4b   : > { %p986_p7 = scmp.lt.u32.totalorder %s1290_s16, %s1438_s0  ;;  %p987_p10 = scmp.lt.u32.totalorder %s985_s14, %s980_s30 }
  0x4c   : > { %p983_p3 = pnand %p982_p0, %p981_p12  ;;  %p989_p1 = scmp.lt.u32.totalorder %s980_s30, %s1290_s16 }
  0x4d   : > { %p988_p13 = por %p987_p10, %p986_p7 }
  0x4e   : > { %p984_p5 = pneg %p983_p3 }
  0x4f   : > { %p990_p2 = por %p989_p1, %p988_p13 }
  0x51   : > { %p991_p4 = pnand %p990_p2, %p984_p5 }
  0x53   : > { %994 = shalt.err (!%p991_p4)
}
  0x54   : > { %s995_s12 = scalar_lea.vmem %s1292_s17, 128  ;;  %s1116_s13 = smov [#allocation3]  }
  0x55   : > { %p996_p8 = scmp.ne.s32.totalorder %s1292_s17, %s995_s12  ;;  %s1000_s10 = sshll.u32 %s1116_s13, 4  ;;  %s1001_s10 = int_to_ptr.vmem [resolvable:$false] %s1000_s10 }
  0x56   : > { %s1002_s15 = scalar_lea.vmem %s1001_s10, 256  ;;  %p1003_p3 = scmp.lt.s32.totalorder %s1292_s17, %s1001_s10 }
  0x57   : > { %p998_p9 = pnand %p996_p8, %p982_p0  ;;  %p1004_p7 = scmp.lt.s32.totalorder %s1002_s15, %s995_s12 }
  0x59   : > { %p999_p12 = pneg %p998_p9  ;;  %p1005_p10 = por %p1004_p7, %p1003_p3 }
  0x5b   : > { %p1006_p13 = pnand %p1005_p10, %p999_p12 }
  0x5d   : > { %1009 = shalt.err (!%p1006_p13)
}
  0x5e   : > { %837 = dma.hbm_to_vmem [thread:$0]  (!%p1294_p11), %s1290_s16, 128, %s1292_s17, %s1298_s26, %s1114_s19, %s1114_s19, %s1115_s20  }
  0x5f   : > { %p1455_p0 = scmp.ne.s32.totalorder %s1450_s29, 0 }
  0x60   : > { %s1332_s30 = sand.u32 (!%p1455_p0), 1, %s1102_s22   ;;  %p1456_p5 = scmp.ne.s32.totalorder (!%p1455_p0), %s1448_s27, 0 }
  0x61   : > { %255 = sbr.rel (%p1455_p0) target bundleno = 944 (0x3b0), region = 40  ;;  %s720_s14 = sshll.u32 (!%p1455_p0), %s1332_s30, 3 }
  0x62   : > { %s258_s7 = scalar_lea.sflag (!%p1455_p0), [#allocation4], %s1332_s30  ;;  %s1336_s12 = scalar_lea.vmem (!%p1455_p0), [#allocation3], %s720_s14 }
  0x68   : > { %1081 = dma.done.wait (%p1456_p5), %s258_s7, 128  }
  0x69   : > { %1083 = vsyncadd (%p1456_p5), %s258_s7, 4294967168  ;;  %p1457_p11 = scmp.eq.s32.totalorder %s1179_s25, 0 }
  0x6b   : > { %1085 = dma.done.wait (%p1457_p11), [#allocation7], 2048   ;;  %p1458_p1 = pmov %p1457_p11 }
  0x6c   : > { %s723_s29 = sshll.u32 %s1332_s30, 4  ;;  %p1459_p2 = scmp.ne.s32.totalorder %s1179_s25, 0 }
  0x6d   : > { %1087 = vsyncadd (%p1458_p1), [#allocation7], 4294965248  ;;  %s1347_s19 = scalar_lea.vmem [#allocation9], %s723_s29  ;;  %v725_v0 = vld [vmem:[%s1439_s1] ss:$0 sm:$0xff] (!%p1459_p2) }
  0x6e   : > { %302 = sbr.rel (%p1459_p2) target bundleno = 117 (0x75), region = 56  ;;  %310 = vst [vmem:[#allocation2] sm:$0xff] (!%p1459_p2), %v725_v0  ;;  %311 = vst [vmem:[#allocation2 + $0x8] sm:$0xff] (!%p1459_p2), %v725_v0 }
  0x75 PF: > { %v891_v1 = vld [vmem:[#allocation6] sm:$0xff]   ;;  %v1117_v2 = vmov 0.0   ;;  %v892_v3 = vld [vmem:[#allocation6 + $0x8] sm:$0xff]   ;;  %vm1118_vm0 = vmmov 0   ;;  %v893_v4 = vld [vmem:[#allocation6 + $0x10] sm:$0xff]   ;;  %v556_v41 = vlaneseq  ;;  %s1119_s18 = smov [#allocation10]  }
  0x76   : > { %771 = vmatprep.subr.bf16.mxu0 %v1117_v2  ;;  %791 = vmatprep.subr.bf16.mxu1 %v1117_v2  ;;  %v894_v5 = vld [vmem:[#allocation6 + $0x18] sm:$0xff]   ;;  %v895_v6 = vld [vmem:[#allocation6 + $0x20] sm:$0xff]   ;;  %v896_v7 = vld [vmem:[#allocation6 + $0x28] sm:$0xff]   ;;  %s608_s26 = sshll.u32 %s1119_s18, 4  ;;  %p1460_p8 = scmp.eq.s32.totalorder %s1179_s25, 3  ;;  %s609_s26 = int_to_ptr.vmem [resolvable:$true] %s608_s26 }
  0x77   : > { %772 = vmatpush3.bf16.msra.mxu0 %v891_v1  ;;  %787 = vmatprep.mubr.msk.bf16.mxu0 %vm1118_vm0, %v1117_v2  ;;  %v897_v8 = vld [vmem:[#allocation6 + $0x30] sm:$0xff]   ;;  %v898_v9 = vld [vmem:[#allocation6 + $0x38] sm:$0xff]   ;;  %v900_v11 = vld [vmem:[#allocation8] sm:$0xff]   ;;  %v557_v42 = vand.u32 127, %v556_v41  ;;  %s1010_s13 = scalar_lea.vmem %s609_s26, 256  ;;  %p1017_p3 = scmp.lt.s32.totalorder %s609_s26, %s609_s26 }
  0x78   : > { %773 = vmatprep.subr.bf16.mxu0 %v1117_v2  ;;  %807 = vmatprep.mubr.msk.bf16.mxu1 %vm1118_vm0, %v1117_v2  ;;  %v899_v10 = vld [vmem:[%s1336_s12] sm:$0xff]   ;;  %v901_v12 = vld [vmem:[#allocation8 + $0x8] sm:$0xff]   ;;  %v904_v15 = vld [vmem:[#allocation8 + $0x20] sm:$0xff]   ;;  %p1011_p4 = scmp.ne.s32.totalorder %s609_s26, %s1010_s13  ;;  %p1018_p7 = scmp.lt.s32.totalorder %s1010_s13, %s1010_s13 }
  0x79   : > { %792 = vmatpush3.bf16.msra.mxu1 %v900_v11  ;;  %v902_v13 = vld [vmem:[#allocation8 + $0x10] sm:$0xff]   ;;  %v903_v14 = vld [vmem:[#allocation8 + $0x18] sm:$0xff]   ;;  %v905_v16 = vld [vmem:[#allocation8 + $0x28] sm:$0xff]   ;;  %vm558_vm1 = vcmp.lt.s32.totalorder %v557_v42, 16 }
  0x7a   : > { %793 = vmatprep.subr.bf16.mxu1 %v1117_v2  ;;  %v906_v17 = vld [vmem:[#allocation8 + $0x30] sm:$0xff]   ;;  %v907_v18 = vld [vmem:[#allocation8 + $0x38] sm:$0xff]   ;;  %v312_v19 = vld [vmem:[#allocation2] sm:$0xff]  ;;  %p1012_p9 = pnand %p1011_p4, %p1460_p8  ;;  %p1019_p10 = por %p1018_p7, %p1017_p3 }
  0x7b   : > { %774 = vmatpush3.bf16.msra.mxu0 %v892_v3  ;;  %v726_v20 = vld [vmem:[%s1441_s3] ss:$0 sm:$0xff]  ;;  %v313_v21 = vld [vmem:[#allocation2 + $0x8] sm:$0xff] }
  0x7c   : > { %775 = vmatprep.subr.bf16.mxu0 %v1117_v2  ;;  %v321_v22 = vmul.f32 %v726_v20, %v312_v19  ;;  %v322_v23 = vmul.f32 %v726_v20, %v313_v21  ;;  %p1013_p12 = pneg %p1012_p9 }
  0x7d   : > { %794 = vmatpush3.bf16.msra.mxu1 %v901_v12 }
  0x7e   : > { %795 = vmatprep.subr.bf16.mxu1 %v1117_v2  ;;  %p1020_p13 = pnand %p1019_p10, %p1013_p12 }
  0x7f   : > { %776 = vmatpush3.bf16.msra.mxu0 %v893_v4 }
  0x80   : > { %777 = vmatprep.subr.bf16.mxu0 %v1117_v2 }
  0x81   : > { %796 = vmatpush3.bf16.msra.mxu1 %v902_v13 }
  0x82   : > { %797 = vmatprep.subr.bf16.mxu1 %v1117_v2 }
  0x83   : > { %778 = vmatpush3.bf16.msra.mxu0 %v894_v5 }
  0x84   : > { %779 = vmatprep.subr.bf16.mxu0 %v1117_v2 }
  0x85   : > { %798 = vmatpush3.bf16.msra.mxu1 %v903_v14 }
  0x86   : > { %799 = vmatprep.subr.bf16.mxu1 %v1117_v2 }
  0x87   : > { %780 = vmatpush3.bf16.msra.mxu0 %v895_v6 }
  0x88   : > { %781 = vmatprep.subr.bf16.mxu0 %v1117_v2 }
  0x89   : > { %800 = vmatpush3.bf16.msra.mxu1 %v904_v15 }
  0x8a   : > { %801 = vmatprep.subr.bf16.mxu1 %v1117_v2 }
  0x8b   : > { %782 = vmatpush3.bf16.msra.mxu0 %v896_v7 }
  0x8c   : > { %783 = vmatprep.subr.bf16.mxu0 %v1117_v2 }
  0x8d   : > { %802 = vmatpush3.bf16.msra.mxu1 %v905_v16 }
  0x8e   : > { %803 = vmatprep.subr.bf16.mxu1 %v1117_v2 }
  0x8f   : > { %784 = vmatpush3.bf16.msra.mxu0 %v897_v8 }
  0x90   : > { %785 = vmatprep.subr.bf16.mxu0 %v1117_v2 }
  0x91   : > { %804 = vmatpush3.bf16.msra.mxu1 %v906_v17 }
  0x92   : > { %805 = vmatprep.subr.bf16.mxu1 %v1117_v2 }
  0x93   : > { %786 = vmatpush3.bf16.msra.mxu0 %v898_v9 }
  0x95   : > { %806 = vmatpush3.bf16.msra.mxu1 %v907_v18 }
  0x96   : > { %788 = vmatmul.mubr.bf16.vlgmr.msra.gmra.mrb[0].mxu0 %v899_v10 }
 0x169   : > { %v429_v24 = vpop.f32.mrb[0].mxu0 }
 0x16a   : > { %v430_v25 = vadd.f32 %v429_v24, %v321_v22  ;;  %v789_v26 = vpop.f32.mrb[1].mxu0 }
 0x16b   : > { %v432_v27 = vpop.f32.mrb[2].mxu0 }
 0x16c   : > { %v436_v28 = vsub.f32 0.0, %v430_v25  ;;  %v433_v29 = vadd.f32 %v432_v27, %v322_v23  ;;  %v790_v30 = vpop.f32.mrb[3].mxu0 }
 0x16e   : > { %v438_v31 = vmul.f32 1.442695, %v436_v28  ;;  %v437_v32 = vsub.f32 0.0, %v433_v29 }
 0x170   : > { %908 = vpow2.f32 %v438_v31  ;;  %v440_v33 = vmul.f32 1.442695, %v437_v32 }
 0x172   : > { %910 = vpow2.f32 %v440_v33 }
 0x17a   : > { %v909_v34 = vpop.eup %908 }
 0x17b   : > { %v442_v35 = vadd.f32 1.0, %v909_v34 }
 0x17c   : > { %v911_v36 = vpop.eup %910 }
 0x17d   : > { %912 = vrcp.f32 %v442_v35  ;;  %v443_v37 = vadd.f32 1.0, %v911_v36 }
 0x17f   : > { %914 = vrcp.f32 %v443_v37 }
 0x187   : > { %v913_v38 = vpop.eup %912 }
 0x188   : > { %446 = vst [vmem:[#allocation2] sm:$0xff] %v913_v38  ;;  %448 = vst [vmem:[#allocation10] sm:$0xff] %v913_v38 }
 0x189   : > { %v915_v39 = vpop.eup %914 }
 0x18a   : > { %447 = vst [vmem:[#allocation2 + $0x8] sm:$0xff] %v915_v39  ;;  %449 = vst [vmem:[#allocation10 + $0x8] sm:$0xff] %v915_v39  ;;  %v450_v40 = vpack.c.bf16 %v915_v39, %v913_v38 }
 0x18c   : > { %808 = vmatmul.mubr.bf16.vlgmr.msra.gmra.mrb[0].mxu1 %v450_v40 }
 0x25f   : > { %v549_v43 = vpop.f32.mrb[0].mxu1 }
 0x260   : > { %v809_v44 = vpop.f32.mrb[1].mxu1  ;;  %v559_v45 = vsel %vm558_vm1, %v549_v43, -1e+30 }
 0x261   : > { %561 = vmax.xlane.f32.xlu0 %v559_v45  ;;  %v552_v46 = vpop.f32.mrb[2].mxu1 }
 0x262   : > { %v810_v47 = vpop.f32.mrb[3].mxu1  ;;  %v560_v48 = vsel %vm558_vm1, %v552_v46, -1e+30 }
 0x265   : > { %563 = vmax.xlane.f32.xlu0 %v560_v48 }
 0x2ee   : > { %v562_v49 = vpop.xlane.xlu0 %561 }
 0x2ef   : > { %v565_v50 = vsub.f32 %v559_v45, %v562_v49 }
 0x2f1   : > { %v567_v51 = vmul.f32 1.442695, %v565_v50 }
 0x2f2   : > { %v564_v52 = vpop.xlane.xlu0 %563 }
 0x2f3   : > { %916 = vpow2.f32 %v567_v51  ;;  %v566_v53 = vsub.f32 %v560_v48, %v564_v52 }
 0x2f5   : > { %v569_v54 = vmul.f32 1.442695, %v566_v53 }
 0x2f7   : > { %918 = vpow2.f32 %v569_v54 }
 0x2fd   : > { %v917_v55 = vpop.eup %916 }
 0x2fe   : > { %571 = vadd.xlane.f32.xlu1 %v917_v55 }
 0x301   : > { %v919_v56 = vpop.eup %918 }
 0x302   : > { %573 = vadd.xlane.f32.xlu1 %v919_v56 }
 0x303   : > { %1023 = shalt.err (!%p1020_p13)
}
 0x304   : > { %s1024_s14 = scalar_lea.hbm %s1444_s6, 256  ;;  %p1461_p5 = pmov %p1460_p8 }
 0x305   : > { %p1025_p0 = scmp.ne.s32.totalorder %s1444_s6, %s1024_s14  ;;  %p1030_p2 = scmp.lt.u32.totalorder %s1024_s14, %s1444_s6 }
 0x307   : > { %p1026_p11 = pnand %p1025_p0, %p1461_p5 }
 0x309   : > { %p1027_p1 = pneg %p1026_p11 }
 0x30b   : > { %p1032_p4 = pnand %p1030_p2, %p1027_p1 }
 0x30d   : > { %1035 = shalt.err (!%p1032_p4)
}
 0x30e   : > { %s1120_s16 = smov 128   ;;  %s1121_s27 = smov 8  }
 0x30f   : > { %p1462_p8 = pmov %p1461_p5  ;;  %s752_s13 = sshll.u32 %s1179_s25, 8 }
 0x310   : > { %s595_s10 = sshll.u32 %s1347_s19, 4  ;;  %s1385_s7 = scalar_lea.hbm %s1443_s5, %s752_s13  ;;  %s1387_s10 = int_to_ptr.vmem [resolvable:$true] %s595_s10 }
 0x311   : > { %823 = dma.vmem_to_hbm [thread:$0]  (%p1462_p8), %s609_s26, 256, %s1444_s6, [#allocation11], %s1120_s16, %s1120_s16, %s1121_s27  }
 0x312   : > { %s582_s26 = scalar_lea.sflag [#allocation5], %s1332_s30  ;;  %s1036_s12 = scalar_lea.vmem %s1387_s10, 256 }
 0x313   : > { %p1037_p9 = scmp.ne.s32.totalorder %s1387_s10, %s1036_s12  ;;  %s1122_s29 = smov [#allocation9]  }
 0x314   : > { %s1040_s20 = sshll.u32 %s1122_s29, 4  ;;  %s1041_s20 = int_to_ptr.vmem [resolvable:$false] %s1040_s20 }
 0x315   : > { %p1038_p12 = pnand %p1037_p9, %p1277_p6  ;;  %s1042_s17 = scalar_lea.vmem %s1041_s20, 512 }
 0x316   : > { %p1043_p7 = scmp.lt.s32.totalorder %s1387_s10, %s1041_s20  ;;  %p1044_p10 = scmp.lt.s32.totalorder %s1042_s17, %s1036_s12 }
 0x317   : > { %p1039_p3 = pneg %p1038_p12 }
 0x318   : > { %p1045_p13 = por %p1044_p10, %p1043_p7 }
 0x31a   : > { %p1046_p0 = pnand %p1045_p13, %p1039_p3 }
 0x38b   : > { %v572_v57 = vpop.xlane.xlu1 %571 }
 0x38c   : > { %920 = vrcp.f32 %v572_v57 }
 0x38f   : > { %v574_v58 = vpop.xlane.xlu1 %573 }
 0x390   : > { %922 = vrcp.f32 %v574_v58 }
 0x396   : > { %v921_v59 = vpop.eup %920 }
 0x397   : > { %v577_v60 = vmul.f32 %v921_v59, %v917_v55 }
 0x399   : > { %579 = vst [vmem:[%s1347_s19] sm:$0xff] %v577_v60 }
 0x39a   : > { %v923_v61 = vpop.eup %922 }
 0x39b   : > { %v578_v62 = vmul.f32 %v923_v61, %v919_v56 }
 0x39d   : > { %580 = vst [vmem:[%s1347_s19 + $0x8] sm:$0xff] %v578_v62 }
 0x39e   : > { %1049 = shalt.err (!%p1046_p0)
}
 0x39f   : > { %s1050_s19 = scalar_lea.hbm %s1385_s7, 256  ;;  %s1054_s15 = scalar_lea.hbm %s1443_s5, 1024 }
 0x3a0   : > { %p1051_p5 = scmp.ne.s32.totalorder %s1385_s7, %s1050_s19  ;;  %p1055_p2 = scmp.lt.u32.totalorder %s1385_s7, %s1443_s5 }
 0x3a1   : > { %p1056_p4 = scmp.lt.u32.totalorder %s1054_s15, %s1050_s19  ;;  %p1058_p9 = scmp.lt.u32.totalorder %s1050_s19, %s1385_s7 }
 0x3a2   : > { %p1052_p11 = pnand %p1051_p5, %p1277_p6 }
 0x3a3   : > { %p1057_p8 = por %p1056_p4, %p1055_p2 }
 0x3a4   : > { %p1053_p1 = pneg %p1052_p11 }
 0x3a5   : > { %p1059_p12 = por %p1058_p9, %p1057_p8 }
 0x3a7   : > { %p1060_p3 = pnand %p1059_p12, %p1053_p1 }
 0x3a9   : > { %1063 = shalt.err (!%p1060_p3)
}
 0x3aa   : > { %821 = dma.vmem_to_hbm [thread:$0]  (%p1277_p6), %s1387_s10, 256, %s1385_s7, %s582_s26, %s1120_s16, %s1120_s16, %s1121_s27  }
 0x3ab   : > { %p1463_p7 = scmp.eq.s32.totalorder %s1179_s25, 3 }
 0x3ad   : > { %1089 = dma.done.wait (%p1463_p7), [#allocation11], 256   ;;  %p1464_p10 = pmov %p1463_p7 }
 0x3af   : > { %1091 = vsyncadd (%p1464_p10), [#allocation11], 4294967040 }
 0x3b0 PF: > { %p849_p13 = scmp.ge.s32.totalorder %s1110_s24, 2  ;;  %s627_s9 = sand.u32 1, %s1098_s21  }
 0x3b1   : > { %p1465_p0 = scmp.ne.s32.totalorder %s1449_s28, 0  ;;  %s628_s12 = scalar_lea.sflag [#allocation5], %s627_s9 }
 0x3b3   : > { %p839_p5 = pnand %p849_p13, %p1465_p0 }
 0x3b5   : > { %1093 = dma.done.wait (!%p839_p5), %s628_s12, 256  }
 0x3b6   : > { %1095 = vsyncadd (!%p839_p5), %s628_s12, 4294967040  ;;  %p22_p6 = scmp.ge.s32.totalorder %s1267_s8, 6   ;;  %s1466_s21 = smov %s1102_s22 }
 0x3b7   : > { %s1467_s22 = smov %s1106_s23  ;;  %s1468_s23 = smov %s1283_s11 }
 0x3b8   : > { %s1469_s24 = smov %s1267_s8  ;;  %24 = sbr.rel (!%p22_p6) target bundleno = 7 (0x7), region = 105 }
 0x3bf   :  { %633 = vsyncpa [#allocation4], 1 }
 0x3c0   :  { %635 = vsyncpa [#allocation4 + $0x1], 1 }
 0x3c1   :  { %636 = vsyncpa [#allocation7], 1 }
 0x3c2   :  { %637 = vsyncpa [#allocation5], 1 }
 0x3c3   :  { %639 = vsyncpa [#allocation5 + $0x1], 1 }
 0x3c4   :  { %640 = vsyncpa [#allocation11], 1 }

</bundles_post_ra>
